<compile_context>
chip_gen: v7x
topology: tpu7x:2x2x1
jax: 0.10.0
libtpu: 0.0.40
codegen_flags: <defaults>
</compile_context>

<pallas_src>
import functools
import math

import jax
import jax.numpy as jnp
from jax.experimental import pallas as pl
from jax.experimental.pallas import tpu as pltpu


_TILE_BYTES_BUDGET = 1 * 1024 * 1024   # ~1 MiB output tiles (85%+ of HBM roofline)
_MIN_TILE_BYTES = 128 * 1024           # don't shrink tiles below this for step count
_MIN_GRID_STEPS = 8                    # >= 4 blocks per TensorCore on v7x


def _round_up(n, m):
    return ((n + m - 1) // m) * m


def _choose_block_rows(n_rows, lane_width):
    """Rows of the (lane-folded) PE table written per grid step."""
    rows_p = _round_up(n_rows, 8)
    bytes_per_row = lane_width * 4  # float32 output
    # Largest block within the per-buffer tile budget.
    block = max(8, min(rows_p, (_TILE_BYTES_BUDGET // bytes_per_row) // 8 * 8))
    # Prefer >= _MIN_GRID_STEPS steps so writeback of step i-1 overlaps compute of
    # step i (and v7x's 2 TCs each get >= 4 blocks), as long as tiles stay big
    # enough that the ~0.35 us/step overhead stays negligible.
    while (pl.cdiv(n_rows, block) < _MIN_GRID_STEPS
           and block > 8
           and (block // 2) * bytes_per_row >= _MIN_TILE_BYTES):
        block = max(8, _round_up(block // 2, 8))
    # Avoid odd block counts > 1 (load imbalance across the 2 TCs on v7x).
    n_blocks = pl.cdiv(n_rows, block)
    if n_blocks > 1 and n_blocks % 2 == 1:
        cand = max(8, _round_up(pl.cdiv(n_rows, n_blocks + 1), 8))
        if pl.cdiv(n_rows, cand) % 2 == 0:
            block = cand
    return min(block, n_rows)


def _pe_kernel(tab_ref, o_ref, *, rows_per_fold):
    """Fill one (block_rows, W) tile; W = rows_per_fold * d_model lanes."""
    i = pl.program_id(0)
    bs, w = o_ref.shape  # static (leading batch dim squeezed by the BlockSpec)

    freq = tab_ref[0:1, :]    # (1, W) per-lane inverse frequency
    group = tab_ref[1:2, :]   # (1, W) which folded row-group this lane encodes
    odd = tab_ref[2:3, :]     # (1, W) 1.0 where the original column is odd (cos)

    # Exact integer sequence position encoded by each (row, lane). Everything is
    # < 2^24 so the f32 arithmetic below is exact; the only rounding is the
    # single pos*freq product, matching the reference table bitwise.
    folded_row = i * bs + jax.lax.broadcasted_iota(jnp.int32, (bs, w), 0)
    pos = folded_row.astype(jnp.float32) * float(rows_per_fold) + group
    angle = pos * freq
    o_ref[...] = jnp.where(odd > 0.5, jnp.cos(angle), jnp.sin(angle))


def positional_embedding(x, d_model, len_max=4096):
    """Pallas equivalent of PositionalEmbedding.forward(x).

    Only seq_len = x.shape[1] is used (as in the PyTorch module).
    Returns a float32 array of shape (1, seq_len, d_model).
    """
    seq_len = x.shape[1]
    assert seq_len <= len_max, "sequence length exceeds len_max"
    assert d_model % 2 == 0, "d_model must be even (as in the PyTorch module)"

    # Lane-dense folding: r consecutive sequence rows share one lane-row so the
    # output's last dim is (ideally) a multiple of 128.
    r = 128 // math.gcd(d_model, 128)
    r = max(1, math.gcd(r, seq_len))
    w = r * d_model
    n_rows = seq_len // r

    block_rows = _choose_block_rows(n_rows, w)
    n_blocks = pl.cdiv(n_rows, block_rows)

    # Constants, built exactly like the PyTorch buffer so angles match bitwise.
    div_term = jnp.exp(
        jnp.arange(0, d_model, 2, dtype=jnp.float32)
        * -(math.log(10000.0) / d_model)
    )
    inv_freq = jnp.repeat(div_term, 2)                          # (d_model,)
    odd = (jnp.arange(d_model) % 2 == 1).astype(jnp.float32)    # (d_model,)
    tab = jnp.stack(
        [
            jnp.tile(inv_freq, (r,)),                                  # freq
            jnp.repeat(jnp.arange(r, dtype=jnp.float32), d_model),     # group
            jnp.tile(odd, (r,)),                                       # parity
        ],
        axis=0,
    )  # (3, W) float32, stays VMEM-resident across all grid steps

    block_bytes = block_rows * w * 4
    vmem_limit = int(min(32 << 20, max(16 << 20, 4 * block_bytes + (4 << 20))))

    out_folded = pl.pallas_call(
        functools.partial(_pe_kernel, rows_per_fold=r),
        out_shape=jax.ShapeDtypeStruct((1, n_rows, w), jnp.float32),
        grid=(n_blocks,),
        in_specs=[pl.BlockSpec((3, w), lambda i: (0, 0))],
        # Leading batch-of-1 dim is squeezed (None) so the kernel sees 2-D tiles.
        out_specs=pl.BlockSpec((None, block_rows, w), lambda i: (0, i, 0)),
        compiler_params=pltpu.CompilerParams(
            dimension_semantics=("parallel",),
            vmem_limit_bytes=vmem_limit,
        ),
    )(tab)

    # Free, contiguous un-fold back to the module's output shape.
    return out_folded.reshape(1, seq_len, d_model)


def _reference_pe(seq_len, d_model):
    """Pure-JAX reference mirroring the PyTorch buffer construction."""
    position = jnp.arange(seq_len, dtype=jnp.float32)[:, None]
    div_term = jnp.exp(
        jnp.arange(0, d_model, 2, dtype=jnp.float32) * -(math.log(10000.0) / d_model)
    )
    pe = jnp.zeros((seq_len, d_model), dtype=jnp.float32)
    pe = pe.at[:, 0::2].set(jnp.sin(position * div_term))
    pe = pe.at[:, 1::2].set(jnp.cos(position * div_term))
    return pe[None, :, :]


if __name__ == "__main__":
    key = jax.random.PRNGKey(0)

    # Primary small test consistent with the module: batch=2, seq=8, d_model=32.
    batch, seq_len, d_model = 2, 8, 32
    # x only contributes its seq length to the output, as in the PyTorch module.
    x = jax.random.normal(key, (batch, seq_len, d_model), dtype=jnp.float32)
    out = jax.block_until_ready(positional_embedding(x, d_model=d_model, len_max=64))
    ref = _reference_pe(seq_len, d_model)
    assert out.shape == (1, seq_len, d_model)
    assert out.dtype == jnp.float32
    assert jnp.allclose(out, ref, atol=1e-5, rtol=1e-5)

    # Lane-dense d_model with a non-multiple-of-8 row count (previously failing case).
    seq_len2, d_model2 = 300, 128
    x2 = jnp.zeros((1, seq_len2, d_model2), dtype=jnp.float32)
    out2 = jax.block_until_ready(positional_embedding(x2, d_model=d_model2))
    assert out2.shape == (1, seq_len2, d_model2)
    assert jnp.allclose(out2, _reference_pe(seq_len2, d_model2), atol=1e-5, rtol=1e-5)

    # d_model that does not divide 128 (exercises the general lane-folding path).
    seq_len3, d_model3 = 96, 48
    x3 = jnp.zeros((1, seq_len3, d_model3), dtype=jnp.float32)
    out3 = jax.block_until_ready(positional_embedding(x3, d_model=d_model3))
    assert out3.shape == (1, seq_len3, d_model3)
    assert jnp.allclose(out3, _reference_pe(seq_len3, d_model3), atol=1e-5, rtol=1e-5)

    print("KERNEL_OK")
</pallas_src>

<mosaic_0001>
module attributes {stable_mosaic.version = 11 : i64} {
  func.func @_pe_kernel(%arg0: i32, %arg1: memref<3x128xf32, #tpu.memory_space<vmem>>, %arg2: memref<1x2x128xf32, #tpu.memory_space<vmem>>) attributes {dimension_semantics = [#tpu.dimension_semantics<parallel>], iteration_bounds = array<i64: 1>, scalar_prefetch = 0 : i64, scratch_operands = 0 : i64, tpu.core_type = #tpu.core_type<tc>, window_params = [{pipeline_mode = #tpu.pipeline_mode<synchronous>, transform_indices = @transform_0, window_bounds = array<i64: 3, 128>}, {transform_indices = @transform_1, window_bounds = array<i64: 1, 2, 128>}]} {
    %c0 = arith.constant 0 : index
    %c0_0 = arith.constant 0 : index
    %0 = vector.load %arg1[%c0, %c0_0] : memref<3x128xf32, #tpu.memory_space<vmem>>, vector<1x128xf32>
    %c1 = arith.constant 1 : index
    %c0_1 = arith.constant 0 : index
    %1 = vector.load %arg1[%c1, %c0_1] : memref<3x128xf32, #tpu.memory_space<vmem>>, vector<1x128xf32>
    %c2 = arith.constant 2 : index
    %c0_2 = arith.constant 0 : index
    %2 = vector.load %arg1[%c2, %c0_2] : memref<3x128xf32, #tpu.memory_space<vmem>>, vector<1x128xf32>
    %c2_i32 = arith.constant 2 : i32
    %3 = arith.muli %arg0, %c2_i32 : i32
    %4 = tpu.iota {dimensions = array<i32: 0>} : vector<2x128xi32>
    %5 = vector.broadcast %3 : i32 to vector<2x128xi32>
    %6 = arith.addi %5, %4 : vector<2x128xi32>
    %7 = arith.sitofp %6 : vector<2x128xi32> to vector<2x128xf32>
    %cst = arith.constant 4.000000e+00 : f32
    %8 = vector.broadcast %cst : f32 to vector<2x128xf32>
    %9 = arith.mulf %7, %8 : vector<2x128xf32>
    %10 = vector.broadcast %1 : vector<1x128xf32> to vector<2x128xf32>
    %11 = arith.addf %9, %10 : vector<2x128xf32>
    %12 = vector.broadcast %0 : vector<1x128xf32> to vector<2x128xf32>
    %13 = arith.mulf %11, %12 : vector<2x128xf32>
    %cst_3 = arith.constant 5.000000e-01 : f32
    %14 = vector.broadcast %cst_3 : f32 to vector<1x128xf32>
    %15 = arith.cmpf ogt, %2, %14 : vector<1x128xf32>
    %16 = math.cos %13 : vector<2x128xf32>
    %17 = math.sin %13 : vector<2x128xf32>
    %18 = vector.shape_cast %15 : vector<1x128xi1> to vector<1x128xi1>
    %19 = vector.broadcast %18 : vector<1x128xi1> to vector<2x128xi1>
    %20 = arith.select %19, %16, %17 : vector<2x128xi1>, vector<2x128xf32>
    %c0_4 = arith.constant 0 : index
    %c0_5 = arith.constant 0 : index
    %c0_6 = arith.constant 0 : index
    %21 = vector.load %arg2[%c0_4, %c0_5, %c0_6] : memref<1x2x128xf32, #tpu.memory_space<vmem>>, vector<1x2x128xf32>
    %22 = vector.shape_cast %21 : vector<1x2x128xf32> to vector<2x128xf32>
    %23 = vector.shape_cast %20 : vector<2x128xf32> to vector<1x2x128xf32>
    tpu.vector_store %arg2[%c0_4, %c0_5, %c0_6], %23 {strides = array<i32>} : memref<1x2x128xf32, #tpu.memory_space<vmem>>, vector<1x2x128xf32>,
    return
  }
  func.func @transform_0(%arg0: i32) -> (i32, i32) {
    %c0_i32 = arith.constant 0 : i32
    %c0_i32_0 = arith.constant 0 : i32
    %c0_i32_1 = arith.constant 0 : i32
    return %c0_i32, %c0_i32_0 : i32, i32
  }
  func.func @transform_1(%arg0: i32) -> (i32, i32, i32) {
    %c0_i32 = arith.constant 0 : i32
    %c0_i32_0 = arith.constant 0 : i32
    %c0_i32_1 = arith.constant 0 : i32
    return %c0_i32, %arg0, %c0_i32_0 : i32, i32, i32
  }
}

</mosaic_0001>

<bundles_post_ra>
// kernel: tpu_custom_call.1
= control target key start
LH: loop header
LB: loop body
LE: loop exit
PB: predicated region body
PF: predicated region fallthrough
CT: control target
= control target key end

     0   :  { %6 = vsyncpa [#allocation3], 0  ;;  %s415_s0 = inlined_call_operand.hbm [shape: f32[3,128], index: 0, kind: input, shape index: {}]   ;;  %s416_s1 = inlined_call_operand.hbm [shape: f32[1,2,128], index: 1, kind: output, shape index: {}]  }
   0x1   :  { %7 = vsyncpa [#allocation4], 0  ;;  %s347_s6 = smov [#allocation2]   ;;  %s299_s10 = scalar_lea.hbm %s415_s0, 64 }
   0x2   :  { %s14_s7 = sshll.u32 %s347_s6, 4  ;;  %p300_p0 = scmp.ne.s32.totalorder %s415_s0, %s299_s10  ;;  %s15_s7 = int_to_ptr.vmem [resolvable:$true] %s14_s7 }
   0x3   :  { %p303_p1 = scmp.lt.u32.totalorder %s299_s10, %s415_s0 }
   0x5   :  { %p305_p2 = pnand %p303_p1, %p300_p0 }
   0x7   :  { %308 = shalt.err (!%p305_p2)
}
   0x8   :  { %s309_s15 = scalar_lea.vmem %s15_s7, 64  ;;  %p314_p4 = scmp.lt.s32.totalorder %s15_s7, %s15_s7 }
   0x9   :  { %p310_p3 = scmp.ne.s32.totalorder %s15_s7, %s309_s15  ;;  %p315_p5 = scmp.lt.s32.totalorder %s309_s15, %s309_s15 }
   0xb   :  { %p316_p6 = por %p315_p5, %p314_p4 }
   0xd   :  { %p317_p7 = pnand %p316_p6, %p310_p3 }
   0xf   :  { %320 = shalt.err (!%p317_p7)
}
  0x10   :  { %17 = dma.hbm_to_vmem [thread:$0]  %s415_s0, 64, %s15_s7, [#allocation3]  }
  0x11   :  { %343 = dma.done.wait [#allocation3], 64  }
  0x12   :  { %344 = vsyncadd [#allocation3], 4294967232  ;;  %v25_v0 = vlaneseq  ;;  %v273_v4 = vld [vmem:[#allocation2] ss:$0 sm:$0xff]  ;;  %v272_v5 = vld [vmem:[#allocation2 + $0x1] ss:$0 sm:$0xff] }
  0x13   :  { %v348_v19 = vmov 683565275   ;;  %v349_v21 = vmov 2475754826   ;;  %v350_v23 = vmov 2131351028  }
  0x14   :  { %v378_v1 = vshrl.u32 %v25_v0, 7  ;;  %v351_v25 = vmov 2102212464   ;;  %v352_v27 = vmov 920167782   ;;  %s355_s0 = smov [#allocation5]  }
  0x15   :  { %v353_v34 = vmov 1326507024   ;;  %s263_s18 = sshll.u32 %s355_s0, 4  ;;  %s264_s18 = int_to_ptr.vmem [resolvable:$true] %s263_s18 }
  0x16   :  { %v29_v2 = vcvt.s32.f32 %v378_v1  ;;  %s321_s19 = scalar_lea.vmem %s264_s18, 32  ;;  %p326_p9 = scmp.lt.s32.totalorder %s264_s18, %s264_s18 }
  0x17   :  { %p322_p8 = scmp.ne.s32.totalorder %s264_s18, %s321_s19  ;;  %p327_p10 = scmp.lt.s32.totalorder %s321_s19, %s321_s19 }
  0x18   :  { %v30_v3 = vmul.f32 4.0, %v29_v2 }
  0x19   :  { %p328_p11 = por %p327_p10, %p326_p9 }
  0x1a   :  { %v35_v6 = vadd.f32 %v272_v5, %v30_v3 }
  0x1b   :  { %p329_p12 = pnand %p328_p11, %p322_p8 }
  0x1c   :  { %v381_v7 = vmul.f32 %v273_v4, %v35_v6 }
  0x1e   :  { %v45_v8 = vand.u32 2139095040, %v381_v7  ;;  %v42_v10 = vand.u32 2147483647, %v381_v7  ;;  %vm44_vm7 = vcmp.lt.s32.totalorder %v381_v7, 0 }
  0x20   :  { %v46_v9 = vshrl.u32 %v45_v8, 23  ;;  %v49_v13 = vand.u32 8388607, %v42_v10  ;;  %vm43_vm8 = vcmp.le.f32.partialorder %v42_v10, 0.7853982 }
  0x22   :  { %v274_v11 = vadd.s32 4294967169, %v46_v9  ;;  %v50_v16 = vor.u32 8388608, %v49_v13 }
  0x24   :  { %v52_v12 = vadd.s32 1, %v274_v11  ;;  %v90_v36 = vshll.u32 %v50_v16, 8 }
  0x26   :  { %vm53_vm0 = vcmp.gt.s32.totalorder %v52_v12, 0 }
  0x27   :  { %v54_v14 = vsel %vm53_vm0, %v52_v12, 0  ;;  %vm134_vm0 = vweird.f32 %v381_v7 }
  0x28   :  { %v56_v15 = vand.u32 31, %v54_v14  ;;  %v55_v17 = vshrl.u32 %v54_v14, 5 }
  0x2a   :  { %v57_v18 = vsub.s32 32, %v56_v15  ;;  %v59_v20 = vshll.u32 %v348_v19, %v56_v15  ;;  %v62_v22 = vshll.u32 %v349_v21, %v56_v15  ;;  %v65_v24 = vshll.u32 %v350_v23, %v56_v15 }
  0x2b   :  { %v68_v26 = vshll.u32 %v351_v25, %v56_v15  ;;  %v71_v28 = vshll.u32 %v352_v27, %v56_v15  ;;  %vm74_vm1 = vcmp.lt.s32.totalorder %v55_v17, 1  ;;  %vm77_vm2 = vcmp.lt.s32.totalorder %v55_v17, 4 }
  0x2c   :  { %v58_v29 = vshrl.u32 %v348_v19, %v57_v18  ;;  %v60_v30 = vshrl.u32 %v349_v21, %v57_v18  ;;  %v63_v31 = vshrl.u32 %v350_v23, %v57_v18  ;;  %v66_v32 = vshrl.u32 %v351_v25, %v57_v18 }
  0x2d   :  { %v69_v33 = vshrl.u32 %v352_v27, %v57_v18  ;;  %v72_v35 = vshrl.u32 %v353_v34, %v57_v18  ;;  %vm75_vm3 = vcmp.lt.s32.totalorder %v55_v17, 2  ;;  %vm76_vm4 = vcmp.lt.s32.totalorder %v55_v17, 3 }
  0x2e   :  { %v61_v37 = vor.u32 %v60_v30, %v59_v20  ;;  %v64_v38 = vor.u32 %v63_v31, %v62_v22  ;;  %v67_v39 = vor.u32 %v66_v32, %v65_v24  ;;  %v252_v32 = vsub.s32 0, %v378_v1 }
  0x2f   :  { %v70_v40 = vor.u32 %v69_v33, %v68_v26  ;;  %v73_v41 = vor.u32 %v72_v35, %v71_v28  ;;  %v23_v28 = vld [vmem:[#allocation2 + $0x2] sm:$0x1]  ;;  %v354_v33 = vmov 0  }
  0x30   :  { %v78_v42 = vsel %vm74_vm1, %v58_v29, %v61_v37  ;;  %v79_v43 = vsel %vm77_vm2, %v67_v39, 2102212464  ;;  %v82_v44 = vsel %vm74_vm1, %v61_v37, %v64_v38  ;;  %v86_v45 = vsel %vm74_vm1, %v64_v38, %v67_v39 }
  0x31   :  { %v80_v46 = vsel %vm76_vm4, %v64_v38, %v79_v43  ;;  %v83_v47 = vsel %vm77_vm2, %v70_v40, 920167782  ;;  %v87_v48 = vsel %vm77_vm2, %v73_v41, 1326507024  ;;  %vm41_vm9 = vcmp.gt.f32.partialorder %v23_v28, 0.5 }
  0x32   :  { %v84_v49 = vsel %vm76_vm4, %v67_v39, %v83_v47  ;;  %v88_v50 = vsel %vm76_vm4, %v70_v40, %v87_v48  ;;  %v81_v51 = vsel %vm75_vm3, %v78_v42, %v80_v46  ;;  %v249_v34 = vsel %vm41_vm9, 1, %v354_v33 }
  0x33   :  { %v85_v52 = vsel %vm75_vm3, %v82_v44, %v84_v49  ;;  %v89_v53 = vsel %vm75_vm3, %v86_v45, %v88_v50  ;;  %v97_v58 = vmul.u32 %v90_v36, %v81_v51  ;;  %v253_v10 = vrot.slane %v249_v34, %v252_v32 }
  0x34   :  { %v387_v54 = vmul.u32.u64.low %v90_v36, %v89_v53  ;;  %v388_v55 = vmul.u32.u64.high %v90_v36, %v89_v53, %v387_v54  ;;  %v390_v56 = vmul.u32.u64.low %v90_v36, %v85_v52  ;;  %v391_v57 = vmul.u32.u64.high %v90_v36, %v85_v52, %v390_v56 }
  0x35   :  { %vm254_vm1 = vcmp.eq.s32.totalorder %v253_v10, 1 }
  0x36   :  { %vm99_vm5 = vc.u32 %v388_v55, %v390_v56  ;;  %v100_v59 = vadd.s32 1, %v391_v57  ;;  %v98_v8 = vadd.s32 %v390_v56, %v388_v55 }
  0x38   :  { %v101_v60 = vsel %vm99_vm5, %v100_v59, %v391_v57 }
  0x39   :  { %v102_v61 = vadd.s32 %v101_v60, %v97_v58 }
  0x3b   :  { %v103_v62 = vadd.s32 536870912, %v102_v61 }
  0x3d   :  { %v104_v63 = vshrl.u32 %v103_v62, 30 }
  0x3f   :  { %v105_v0 = vshll.u32 %v104_v63, 30  ;;  %v128_v21 = vsub.s32 4, %v104_v63 }
  0x41   :  { %v106_v2 = vsub.s32 %v102_v61, %v105_v0  ;;  %v129_v24 = vsel %vm44_vm7, %v128_v21, %v104_v63 }
  0x42   :  { %v131_v27 = vsel %vm43_vm8, 0, %v129_v24 }
  0x43   :  { %v108_v3 = vsub.s32 0, %v106_v2  ;;  %v238_v29 = vadd.s32 3, %v131_v27  ;;  %v135_v30 = vand.u32 3, %v131_v27 }
  0x45   :  { %v275_v4 = vmin.u32 %v108_v3, %v106_v2  ;;  %v239_v31 = vand.u32 3, %v238_v29  ;;  %vm140_vm10 = vcmp.eq.s32.totalorder %v135_v30, 2  ;;  %vm137_vm12 = vcmp.eq.s32.totalorder %v135_v30, 0 }
  0x46   :  { %vm136_vm14 = vcmp.lt.s32.totalorder %v135_v30, 2 }
  0x47   :  { %v110_v5 = vclz %v275_v4  ;;  %vm244_vm11 = vcmp.eq.s32.totalorder %v239_v31, 2  ;;  %vm241_vm13 = vcmp.eq.s32.totalorder %v239_v31, 0  ;;  %vm240_vm15 = vcmp.lt.s32.totalorder %v239_v31, 2 }
  0x49   :  { %v276_v6 = vadd.s32 4294967294, %v110_v5 }
  0x4b   :  { %vm277_vm6 = vcmp.lt.s32.totalorder %v276_v6, 0 }
  0x4c   :  { %v113_v9 = vsel %vm277_vm6, 0, %v276_v6 }
  0x4d   :  { %v114_v11 = vsub.s32 32, %v113_v9  ;;  %v115_v12 = vshll.u32 %v106_v2, %v113_v9  ;;  %v118_v13 = vsub.s32 4294967266, %v113_v9 }
  0x4f   :  { %v116_v14 = vshrl.u32 %v98_v8, %v114_v11  ;;  %v119_v15 = vadd.s32 127, %v118_v13 }
  0x51   :  { %v117_v16 = vor.u32 %v116_v14, %v115_v12  ;;  %v120_v17 = vshll.u32 %v119_v15, 23 }
  0x53   :  { %v121_v18 = vor.u32 4788187, %v120_v17  ;;  %v124_v19 = vcvt.s32.f32 %v117_v16 }
  0x55   :  { %v122_v20 = vand.u32 2147483647, %v121_v18 }
  0x57   :  { %v125_v22 = vmul.f32 %v124_v19, %v122_v20 }
  0x59   :  { %v126_v23 = vxor.u32 2147483648, %v125_v22 }
  0x5b   :  { %v127_v25 = vsel %vm44_vm7, %v126_v23, %v125_v22 }
  0x5c   :  { %v130_v26 = vsel %vm43_vm8, %v381_v7, %v127_v25 }
  0x5d   :  { %295 = vcosq.f32 %v130_v26 }
  0x5e   :  { %297 = vsinq.f32 %v130_v26 }
  0x67   :  { %v296_v35 = vpop.eup %295 }
  0x68   :  { %v298_v36 = vpop.eup %297  ;;  %v141_v37 = vxor.u32 2147483648, %v296_v35 }
  0x69   :  { %v138_v38 = vxor.u32 2147483648, %v298_v36 }
  0x6a   :  { %v142_v39 = vsel %vm140_vm10, %v141_v37, %v298_v36  ;;  %v246_v40 = vsel %vm244_vm11, %v141_v37, %v298_v36 }
  0x6b   :  { %v139_v1 = vsel %vm137_vm12, %v296_v35, %v138_v38  ;;  %v243_v41 = vsel %vm241_vm13, %v296_v35, %v138_v38 }
  0x6c   :  { %v143_v42 = vsel %vm136_vm14, %v139_v1, %v142_v39  ;;  %v247_v43 = vsel %vm240_vm15, %v243_v41, %v246_v40 }
  0x6d   :  { %v144_v44 = vsel %vm134_vm0, nan, %v143_v42  ;;  %v248_v45 = vsel %vm134_vm0, nan, %v247_v43 }
  0x6e   :  { %v255_v46 = vsel %vm254_vm1, %v144_v44, %v248_v45 }
  0x6f   :  { %256 = vst [vmem:[#allocation5] sm:$0x3] %v255_v46 }
  0x70   :  { %332 = shalt.err (!%p329_p12)
}
  0x71   :  { %s333_s22 = scalar_lea.hbm %s416_s1, 32 }
  0x72   :  { %p334_p13 = scmp.ne.s32.totalorder %s416_s1, %s333_s22  ;;  %p337_p0 = scmp.lt.u32.totalorder %s333_s22, %s416_s1 }
  0x74   :  { %p339_p1 = pnand %p337_p0, %p334_p13 }
  0x76   :  { %342 = shalt.err (!%p339_p1)
}
  0x77   :  { %266 = dma.vmem_to_hbm [thread:$0]  %s264_s18, 32, %s416_s1, [#allocation4]  }
  0x78   :  { %345 = dma.done.wait [#allocation4], 32  }
  0x79   :  { %346 = vsyncadd [#allocation4], 4294967264 }
  0x7a   :  { %270 = vsyncpa [#allocation3], 1 }
  0x7b   :  { %271 = vsyncpa [#allocation4], 1 }

</bundles_post_ra>
